<compile_context>
chip_gen: v7x
topology: tpu7x:2x2x1
jax: 0.10.0
libtpu: 0.0.40
codegen_flags: <defaults>
</compile_context>

<pallas_src>
import functools

import numpy as np
import jax
import jax.numpy as jnp
from jax.experimental import pallas as pl
from jax.experimental.pallas import tpu as pltpu


def _round_up(x, m):
    return (x + m - 1) // m * m


def _seg_head_kernel(x_ref, w_ref, b_ref, att_ref, mask_ref, o_ref,
                     xf_ref, p_ref, *, H, W, Cin, Cout, K, pad, data_off):
    # x_ref:   (1, Cin, H*W)        one batch element, spatially flattened (NCHW order)
    # w_ref:   (Cout, K*K*Cin)      conv weights, tap-major / channel-minor rows
    # b_ref:   (Cout, 1)            conv bias
    # att_ref: (1, Cout, H*W)       attention map (flattened)
    # mask_ref:(K, H*W)             per-dx horizontal validity mask (1.0 / 0.0)
    # o_ref:   (1, Cout, H*W)       output
    # xf_ref:  (Cin, L)             VMEM scratch: flat zero-padded image
    # p_ref:   (K*K*Cin, H*W)       VMEM scratch: im2col patch matrix
    S = H * W

    # 1) flat zero-padded image.  Re-zero every step: scratch persists across grid
    #    iterations and the "parallel" axis may be split across TensorCores.
    xf_ref[...] = jnp.zeros_like(xf_ref)
    xf_ref[:, data_off:data_off + S] = x_ref[0].astype(xf_ref.dtype)

    # 2) im2col: tap (dy, dx) == flat shift by (dy-pad)*W + (dx-pad).  Vertical
    #    out-of-range reads land in the zero prologue/epilogue of xf_ref; columns
    #    that would wrap across a row boundary are zeroed by the per-dx mask.
    for dy in range(K):
        for dx in range(K):
            t = dy * K + dx
            start = data_off + (dy - pad) * W + (dx - pad)
            tap = xf_ref[:, start:start + S]                  # (Cin, S)
            if dx != pad:
                tap = tap * mask_ref[dx:dx + 1, :]
            p_ref[t * Cin:(t + 1) * Cin, :] = tap

    # 3) single folded conv matmul on the MXU (lane dim = spatial, f32 accumulate).
    y = jnp.dot(w_ref[...], p_ref[...], preferred_element_type=jnp.float32)
    y = y + b_ref[...]                                        # (Cout, 1) broadcast
    # upsampling == 1 -> Identity; activation None -> Identity.
    y = y * att_ref[0].astype(jnp.float32)
    o_ref[0] = y.astype(o_ref.dtype)


def segmentation_head_en_to_seg(x_nchw, att_nchw, weight_oihw, bias,
                                *, kernel_size=3, compute_dtype=jnp.float32):
    """x: (N,Cin,H,W); att: (N,Cout,H,W); weight: (Cout,Cin,K,K); bias: (Cout,).

    compute_dtype=jnp.bfloat16 can be used on v6e/v7x to halve MXU-input bytes
    (accumulation stays f32); default f32 keeps exact parity with the reference.
    """
    N, Cin, H, W = x_nchw.shape
    Cout = weight_oihw.shape[0]
    K = kernel_size
    pad = K // 2
    S = H * W
    KKC = K * K * Cin

    # Free row-major reshapes only (no data movement) — NCHW layout is kept.
    x2 = x_nchw.reshape(N, Cin, S)
    att2 = att_nchw.reshape(N, Cout, S)

    # (Cout, Cin, K, K) -> (Cout, K*K*Cin), matching patch row order t = dy*K + dx.
    w2 = jnp.transpose(weight_oihw, (0, 2, 3, 1)).reshape(Cout, KKC).astype(compute_dtype)
    b2 = bias.reshape(Cout, 1).astype(jnp.float32)

    # Per-dx horizontal validity mask over the flattened spatial axis (trace-time).
    xs = np.arange(W)
    mask_np = np.empty((K, S), dtype=np.float32)
    for dx in range(K):
        valid = ((xs + dx - pad >= 0) & (xs + dx - pad < W)).astype(np.float32)
        mask_np[dx] = np.tile(valid, H)
    masks = jnp.asarray(mask_np).astype(compute_dtype)

    data_off = _round_up(pad * (W + 1), 128)            # lane-aligned data placement
    flat_len = _round_up(data_off + pad * (W + 1) + S, 128)

    kernel = functools.partial(_seg_head_kernel, H=H, W=W, Cin=Cin, Cout=Cout,
                               K=K, pad=pad, data_off=data_off)

    isz = jnp.dtype(x_nchw.dtype).itemsize
    cost = pl.CostEstimate(
        flops=2 * N * S * KKC * Cout + 2 * N * Cout * S,
        transcendentals=0,
        bytes_accessed=(N * Cin * S + 2 * N * Cout * S) * isz
                       + (Cout * KKC + Cout + K * S) * 4,
    )

    out2 = pl.pallas_call(
        kernel,
        out_shape=jax.ShapeDtypeStruct((N, Cout, S), x_nchw.dtype),
        grid_spec=pltpu.PrefetchScalarGridSpec(
            num_scalar_prefetch=0,
            grid=(N,),
            in_specs=[
                pl.BlockSpec((1, Cin, S), lambda n: (n, 0, 0)),
                pl.BlockSpec((Cout, KKC), lambda n: (0, 0)),
                pl.BlockSpec((Cout, 1), lambda n: (0, 0)),
                pl.BlockSpec((1, Cout, S), lambda n: (n, 0, 0)),
                pl.BlockSpec((K, S), lambda n: (0, 0)),
            ],
            out_specs=pl.BlockSpec((1, Cout, S), lambda n: (n, 0, 0)),
            scratch_shapes=[
                pltpu.VMEM((Cin, flat_len), compute_dtype),   # flat padded image
                pltpu.VMEM((KKC, S), compute_dtype),          # im2col patch matrix
            ],
        ),
        compiler_params=pltpu.CompilerParams(
            dimension_semantics=("parallel",)),
        cost_estimate=cost,
    )(x2, w2, b2, att2, masks)

    # Output is already (N, Cout, H*W) in NCHW order; final reshape is free.
    return out2.reshape(N, Cout, H, W)


# TODO(synk): bilinear upsampling (upsampling > 1) not implemented; module default
#             (upsampling=1 -> Identity) and activation=None -> Identity are covered.
# TODO(synk): for large H*W the per-batch whole-image block should be spatially
#             tiled (grid over row tiles with a halo) to fit v7x's 64 MiB VMEM.


if __name__ == "__main__":
    # Small shapes consistent with the module's forward.
    N, Cin, Cout, H, W = 2, 4, 3, 16, 16

    key = jax.random.PRNGKey(0)
    k_x, k_att, k_w, k_b = jax.random.split(key, 4)

    x = jax.random.normal(k_x, (N, Cin, H, W), dtype=jnp.float32)
    att_all = jax.random.uniform(k_att, (N, Cout, H, W), dtype=jnp.float32)

    # Conv2d parameters (OIHW like PyTorch).
    weight = 0.1 * jax.random.normal(k_w, (Cout, Cin, 3, 3), dtype=jnp.float32)
    bias = 0.01 * jax.random.normal(k_b, (Cout,), dtype=jnp.float32)

    out = segmentation_head_en_to_seg(x, att_all, weight, bias, kernel_size=3)
    out = jax.block_until_ready(out)

    # Pure-JAX reference (conv + bias + attention multiply).
    ref = jax.lax.conv_general_dilated(
        x, weight, window_strides=(1, 1), padding=((1, 1), (1, 1)),
        dimension_numbers=("NCHW", "OIHW", "NCHW"))
    ref = (ref + bias[None, :, None, None]) * att_all

    assert out.shape == (N, Cout, H, W)
    assert jnp.allclose(out, ref, atol=1e-4, rtol=1e-4)

    print("KERNEL_OK")
</pallas_src>

<mosaic_0001>
module attributes {stable_mosaic.version = 11 : i64} {
  func.func @_seg_head_kernel(%arg0: i32, %arg1: memref<1x4x256xf32, #tpu.memory_space<vmem>>, %arg2: memref<3x36xf32, #tpu.memory_space<vmem>>, %arg3: memref<3x1xf32, #tpu.memory_space<vmem>>, %arg4: memref<1x3x256xf32, #tpu.memory_space<vmem>>, %arg5: memref<3x256xf32, #tpu.memory_space<vmem>>, %arg6: memref<1x3x256xf32, #tpu.memory_space<vmem>>, %arg7: memref<4x512xf32, #tpu.memory_space<vmem>>, %arg8: memref<36x256xf32, #tpu.memory_space<vmem>>) attributes {dimension_semantics = [#tpu.dimension_semantics<parallel>], iteration_bounds = array<i64: 2>, scalar_prefetch = 0 : i64, scratch_operands = 2 : i64, tpu.core_type = #tpu.core_type<tc>, window_params = [{transform_indices = @transform_0, window_bounds = array<i64: 1, 4, 256>}, {pipeline_mode = #tpu.pipeline_mode<synchronous>, transform_indices = @transform_1, window_bounds = array<i64: 3, 36>}, {pipeline_mode = #tpu.pipeline_mode<synchronous>, transform_indices = @transform_2, window_bounds = array<i64: 3, 1>}, {transform_indices = @transform_3, window_bounds = array<i64: 1, 3, 256>}, {pipeline_mode = #tpu.pipeline_mode<synchronous>, transform_indices = @transform_4, window_bounds = array<i64: 3, 256>}, {transform_indices = @transform_5, window_bounds = array<i64: 1, 3, 256>}]} {
    %cst = arith.constant 0.000000e+00 : f32
    %0 = vector.broadcast %cst : f32 to vector<4x512xf32>
    %c0 = arith.constant 0 : index
    %c0_0 = arith.constant 0 : index
    %1 = vector.load %arg7[%c0, %c0_0] : memref<4x512xf32, #tpu.memory_space<vmem>>, vector<4x512xf32>
    tpu.vector_store %arg7[%c0, %c0_0], %0 {strides = array<i32>} : memref<4x512xf32, #tpu.memory_space<vmem>>, vector<4x512xf32>,
    %c0_1 = arith.constant 0 : index
    %c0_2 = arith.constant 0 : index
    %c0_3 = arith.constant 0 : index
    %2 = vector.load %arg1[%c0_1, %c0_2, %c0_3] : memref<1x4x256xf32, #tpu.memory_space<vmem>>, vector<1x4x256xf32>
    %3 = vector.shape_cast %2 : vector<1x4x256xf32> to vector<4x256xf32>
    %c0_4 = arith.constant 0 : index
    %c128 = arith.constant 128 : index
    %4 = vector.load %arg7[%c0_4, %c128] : memref<4x512xf32, #tpu.memory_space<vmem>>, vector<4x256xf32>
    tpu.vector_store %arg7[%c0_4, %c128], %3 {strides = array<i32>} : memref<4x512xf32, #tpu.memory_space<vmem>>, vector<4x256xf32>,
    %c0_5 = arith.constant 0 : index
    %c111 = arith.constant 111 : index
    %5 = vector.load %arg7[%c0_5, %c111] : memref<4x512xf32, #tpu.memory_space<vmem>>, vector<4x256xf32>
    %c0_6 = arith.constant 0 : index
    %c0_7 = arith.constant 0 : index
    %6 = vector.load %arg5[%c0_6, %c0_7] : memref<3x256xf32, #tpu.memory_space<vmem>>, vector<1x256xf32>
    %7 = vector.broadcast %6 : vector<1x256xf32> to vector<4x256xf32>
    %8 = arith.mulf %5, %7 : vector<4x256xf32>
    %c0_8 = arith.constant 0 : index
    %c0_9 = arith.constant 0 : index
    %9 = vector.load %arg8[%c0_8, %c0_9] : memref<36x256xf32, #tpu.memory_space<vmem>>, vector<4x256xf32>
    tpu.vector_store %arg8[%c0_8, %c0_9], %8 {strides = array<i32>} : memref<36x256xf32, #tpu.memory_space<vmem>>, vector<4x256xf32>,
    %c0_10 = arith.constant 0 : index
    %c112 = arith.constant 112 : index
    %10 = vector.load %arg7[%c0_10, %c112] : memref<4x512xf32, #tpu.memory_space<vmem>>, vector<4x256xf32>
    %c4 = arith.constant 4 : index
    %c0_11 = arith.constant 0 : index
    %11 = vector.load %arg8[%c4, %c0_11] : memref<36x256xf32, #tpu.memory_space<vmem>>, vector<4x256xf32>
    tpu.vector_store %arg8[%c4, %c0_11], %10 {strides = array<i32>} : memref<36x256xf32, #tpu.memory_space<vmem>>, vector<4x256xf32>,
    %c0_12 = arith.constant 0 : index
    %c113 = arith.constant 113 : index
    %12 = vector.load %arg7[%c0_12, %c113] : memref<4x512xf32, #tpu.memory_space<vmem>>, vector<4x256xf32>
    %c2 = arith.constant 2 : index
    %c0_13 = arith.constant 0 : index
    %13 = vector.load %arg5[%c2, %c0_13] : memref<3x256xf32, #tpu.memory_space<vmem>>, vector<1x256xf32>
    %14 = vector.broadcast %13 : vector<1x256xf32> to vector<4x256xf32>
    %15 = arith.mulf %12, %14 : vector<4x256xf32>
    %c8 = arith.constant 8 : index
    %c0_14 = arith.constant 0 : index
    %16 = vector.load %arg8[%c8, %c0_14] : memref<36x256xf32, #tpu.memory_space<vmem>>, vector<4x256xf32>
    tpu.vector_store %arg8[%c8, %c0_14], %15 {strides = array<i32>} : memref<36x256xf32, #tpu.memory_space<vmem>>, vector<4x256xf32>,
    %c0_15 = arith.constant 0 : index
    %c127 = arith.constant 127 : index
    %17 = vector.load %arg7[%c0_15, %c127] : memref<4x512xf32, #tpu.memory_space<vmem>>, vector<4x256xf32>
    %c0_16 = arith.constant 0 : index
    %c0_17 = arith.constant 0 : index
    %18 = vector.load %arg5[%c0_16, %c0_17] : memref<3x256xf32, #tpu.memory_space<vmem>>, vector<1x256xf32>
    %19 = vector.broadcast %18 : vector<1x256xf32> to vector<4x256xf32>
    %20 = arith.mulf %17, %19 : vector<4x256xf32>
    %c12 = arith.constant 12 : index
    %c0_18 = arith.constant 0 : index
    %21 = vector.load %arg8[%c12, %c0_18] : memref<36x256xf32, #tpu.memory_space<vmem>>, vector<4x256xf32>
    tpu.vector_store %arg8[%c12, %c0_18], %20 {strides = array<i32>} : memref<36x256xf32, #tpu.memory_space<vmem>>, vector<4x256xf32>,
    %c0_19 = arith.constant 0 : index
    %c128_20 = arith.constant 128 : index
    %22 = vector.load %arg7[%c0_19, %c128_20] : memref<4x512xf32, #tpu.memory_space<vmem>>, vector<4x256xf32>
    %c16 = arith.constant 16 : index
    %c0_21 = arith.constant 0 : index
    %23 = vector.load %arg8[%c16, %c0_21] : memref<36x256xf32, #tpu.memory_space<vmem>>, vector<4x256xf32>
    tpu.vector_store %arg8[%c16, %c0_21], %22 {strides = array<i32>} : memref<36x256xf32, #tpu.memory_space<vmem>>, vector<4x256xf32>,
    %c0_22 = arith.constant 0 : index
    %c129 = arith.constant 129 : index
    %24 = vector.load %arg7[%c0_22, %c129] : memref<4x512xf32, #tpu.memory_space<vmem>>, vector<4x256xf32>
    %c2_23 = arith.constant 2 : index
    %c0_24 = arith.constant 0 : index
    %25 = vector.load %arg5[%c2_23, %c0_24] : memref<3x256xf32, #tpu.memory_space<vmem>>, vector<1x256xf32>
    %26 = vector.broadcast %25 : vector<1x256xf32> to vector<4x256xf32>
    %27 = arith.mulf %24, %26 : vector<4x256xf32>
    %c20 = arith.constant 20 : index
    %c0_25 = arith.constant 0 : index
    %28 = vector.load %arg8[%c20, %c0_25] : memref<36x256xf32, #tpu.memory_space<vmem>>, vector<4x256xf32>
    tpu.vector_store %arg8[%c20, %c0_25], %27 {strides = array<i32>} : memref<36x256xf32, #tpu.memory_space<vmem>>, vector<4x256xf32>,
    %c0_26 = arith.constant 0 : index
    %c143 = arith.constant 143 : index
    %29 = vector.load %arg7[%c0_26, %c143] : memref<4x512xf32, #tpu.memory_space<vmem>>, vector<4x256xf32>
    %c0_27 = arith.constant 0 : index
    %c0_28 = arith.constant 0 : index
    %30 = vector.load %arg5[%c0_27, %c0_28] : memref<3x256xf32, #tpu.memory_space<vmem>>, vector<1x256xf32>
    %31 = vector.broadcast %30 : vector<1x256xf32> to vector<4x256xf32>
    %32 = arith.mulf %29, %31 : vector<4x256xf32>
    %c24 = arith.constant 24 : index
    %c0_29 = arith.constant 0 : index
    %33 = vector.load %arg8[%c24, %c0_29] : memref<36x256xf32, #tpu.memory_space<vmem>>, vector<4x256xf32>
    tpu.vector_store %arg8[%c24, %c0_29], %32 {strides = array<i32>} : memref<36x256xf32, #tpu.memory_space<vmem>>, vector<4x256xf32>,
    %c0_30 = arith.constant 0 : index
    %c144 = arith.constant 144 : index
    %34 = vector.load %arg7[%c0_30, %c144] : memref<4x512xf32, #tpu.memory_space<vmem>>, vector<4x256xf32>
    %c28 = arith.constant 28 : index
    %c0_31 = arith.constant 0 : index
    %35 = vector.load %arg8[%c28, %c0_31] : memref<36x256xf32, #tpu.memory_space<vmem>>, vector<4x256xf32>
    tpu.vector_store %arg8[%c28, %c0_31], %34 {strides = array<i32>} : memref<36x256xf32, #tpu.memory_space<vmem>>, vector<4x256xf32>,
    %c0_32 = arith.constant 0 : index
    %c145 = arith.constant 145 : index
    %36 = vector.load %arg7[%c0_32, %c145] : memref<4x512xf32, #tpu.memory_space<vmem>>, vector<4x256xf32>
    %c2_33 = arith.constant 2 : index
    %c0_34 = arith.constant 0 : index
    %37 = vector.load %arg5[%c2_33, %c0_34] : memref<3x256xf32, #tpu.memory_space<vmem>>, vector<1x256xf32>
    %38 = vector.broadcast %37 : vector<1x256xf32> to vector<4x256xf32>
    %39 = arith.mulf %36, %38 : vector<4x256xf32>
    %c32 = arith.constant 32 : index
    %c0_35 = arith.constant 0 : index
    %40 = vector.load %arg8[%c32, %c0_35] : memref<36x256xf32, #tpu.memory_space<vmem>>, vector<4x256xf32>
    tpu.vector_store %arg8[%c32, %c0_35], %39 {strides = array<i32>} : memref<36x256xf32, #tpu.memory_space<vmem>>, vector<4x256xf32>,
    %c0_36 = arith.constant 0 : index
    %c0_37 = arith.constant 0 : index
    %41 = vector.load %arg2[%c0_36, %c0_37] : memref<3x36xf32, #tpu.memory_space<vmem>>, vector<3x36xf32>
    %c0_38 = arith.constant 0 : index
    %c0_39 = arith.constant 0 : index
    %42 = vector.load %arg8[%c0_38, %c0_39] : memref<36x256xf32, #tpu.memory_space<vmem>>, vector<36x256xf32>
    %cst_40 = arith.constant dense<0.000000e+00> : vector<3x256xf32>
    %43 = tpu.matmul %41, %42, %cst_40 {dimension_numbers = #tpu.dot_dimension_numbers<[1], [0], [0], [1], [0, 0, 1, 1], [], []>} : vector<3x36xf32>, vector<36x256xf32>, vector<3x256xf32> -> vector<3x256xf32>
    %c0_41 = arith.constant 0 : index
    %c0_42 = arith.constant 0 : index
    %44 = vector.load %arg3[%c0_41, %c0_42] : memref<3x1xf32, #tpu.memory_space<vmem>>, vector<3x1xf32>
    %45 = vector.broadcast %44 : vector<3x1xf32> to vector<3x256xf32>
    %46 = arith.addf %43, %45 : vector<3x256xf32>
    %c0_43 = arith.constant 0 : index
    %c0_44 = arith.constant 0 : index
    %c0_45 = arith.constant 0 : index
    %47 = vector.load %arg4[%c0_43, %c0_44, %c0_45] : memref<1x3x256xf32, #tpu.memory_space<vmem>>, vector<1x3x256xf32>
    %48 = vector.shape_cast %47 : vector<1x3x256xf32> to vector<3x256xf32>
    %49 = arith.mulf %46, %48 : vector<3x256xf32>
    %c0_46 = arith.constant 0 : index
    %c0_47 = arith.constant 0 : index
    %c0_48 = arith.constant 0 : index
    %50 = vector.load %arg6[%c0_46, %c0_47, %c0_48] : memref<1x3x256xf32, #tpu.memory_space<vmem>>, vector<1x3x256xf32>
    %51 = vector.shape_cast %50 : vector<1x3x256xf32> to vector<3x256xf32>
    %52 = vector.shape_cast %49 : vector<3x256xf32> to vector<1x3x256xf32>
    tpu.vector_store %arg6[%c0_46, %c0_47, %c0_48], %52 {strides = array<i32>} : memref<1x3x256xf32, #tpu.memory_space<vmem>>, vector<1x3x256xf32>,
    return
  }
  func.func @transform_0(%arg0: i32) -> (i32, i32, i32) {
    %c0_i32 = arith.constant 0 : i32
    %c0_i32_0 = arith.constant 0 : i32
    %c0_i32_1 = arith.constant 0 : i32
    return %arg0, %c0_i32, %c0_i32_0 : i32, i32, i32
  }
  func.func @transform_1(%arg0: i32) -> (i32, i32) {
    %c0_i32 = arith.constant 0 : i32
    %c0_i32_0 = arith.constant 0 : i32
    %c0_i32_1 = arith.constant 0 : i32
    return %c0_i32, %c0_i32_0 : i32, i32
  }
  func.func @transform_2(%arg0: i32) -> (i32, i32) {
    %c0_i32 = arith.constant 0 : i32
    %c0_i32_0 = arith.constant 0 : i32
    %c0_i32_1 = arith.constant 0 : i32
    return %c0_i32, %c0_i32_0 : i32, i32
  }
  func.func @transform_3(%arg0: i32) -> (i32, i32, i32) {
    %c0_i32 = arith.constant 0 : i32
    %c0_i32_0 = arith.constant 0 : i32
    %c0_i32_1 = arith.constant 0 : i32
    return %arg0, %c0_i32, %c0_i32_0 : i32, i32, i32
  }
  func.func @transform_4(%arg0: i32) -> (i32, i32) {
    %c0_i32 = arith.constant 0 : i32
    %c0_i32_0 = arith.constant 0 : i32
    %c0_i32_1 = arith.constant 0 : i32
    return %c0_i32, %c0_i32_0 : i32, i32
  }
  func.func @transform_5(%arg0: i32) -> (i32, i32, i32) {
    %c0_i32 = arith.constant 0 : i32
    %c0_i32_0 = arith.constant 0 : i32
    %c0_i32_1 = arith.constant 0 : i32
    return %arg0, %c0_i32, %c0_i32_0 : i32, i32, i32
  }
}

</mosaic_0001>

<bundles_post_ra>
// kernel: tpu_custom_call.1
= control target key start
LH: loop header
LB: loop body
LE: loop exit
PB: predicated region body
PF: predicated region fallthrough
CT: control target
= control target key end

     0   :  { %s798_s18 = smov 0   ;;  %s912_s0 = inlined_call_operand.vmem [shape: f32[2,4,256], index: 0, kind: input, shape index: {}]   ;;  %s913_s1 = inlined_call_operand.vmem [shape: f32[3,36], index: 1, kind: input, shape index: {}]   ;;  %s914_s2 = inlined_call_operand.vmem [shape: f32[3,1], index: 2, kind: input, shape index: {}]   ;;  %s915_s3 = inlined_call_operand.vmem [shape: f32[2,3,256], index: 3, kind: input, shape index: {}]   ;;  %s916_s4 = inlined_call_operand.vmem [shape: f32[3,256], index: 4, kind: input, shape index: {}]   ;;  %s917_s5 = inlined_call_operand.vmem [shape: f32[2,3,256], index: 5, kind: output, shape index: {}]  }
   0x1 LB: > { %s695_s19 = sadd.s32 4294967295, %s756_s18   ;;  %p699_p0 = scmp.ge.s32.totalorder %s756_s18, 1  ;;  %s756_s18 = sphi %s798_s18, %s15_s18  }
   0x2   : > { %p197_p1 = scmp.lt.s32.totalorder %s756_s18, 3 }
   0x4   : > { %p198_p2 = pnand %p699_p0, %p197_p1 }
   0x5   : > { %v253_v0 = vlaneseq (!%p198_p2)  ;;  %v758_v1 = vmov (!%p198_p2), 0.0   ;;  %v347_v3 = vld [vmem:[%s916_s4] ss:$4 sm:$0x3] (!%p198_p2)  ;;  %p230_p3 = scmp.lt.s32.totalorder (!%p198_p2), %s695_s19, 1  ;;  %s759_s11 = smov (!%p198_p2), 127  }
   0x6   : > { %201 = sbr.rel (%p198_p2) target bundleno = 518 (0x206), region = 40  ;;  %245 = vst [vmem:[#allocation2] sm:$0xff] (!%p198_p2), %v758_v1  ;;  %246 = vst [vmem:[#allocation2 + $0x8] sm:$0xff] (!%p198_p2), %v758_v1  ;;  %610 = vmatprep.mubr.f32.mxu0 (!%p198_p2), %v758_v1  ;;  %v251_v4 = vld [vmem:[%s916_s4] ss:$4 sm:$0x3] (!%p198_p2) }
   0x7   : > { %v254_v2 = vshrl.u32 (!%p198_p2), %v253_v0, 7  ;;  %v706_v5 = vld [vmem:[%s916_s4 + $0x2] ss:$4 sm:$0x3] (!%p198_p2)  ;;  %s760_s12 = smov (!%p198_p2), 111   ;;  %s761_s13 = smov (!%p198_p2), 113  }
   0x8   : > { %v429_v8 = vld [vmem:[%s916_s4] ss:$4 sm:$0x3] (!%p198_p2)  ;;  %v707_v13 = vld [vmem:[%s916_s4 + $0x2] ss:$4 sm:$0x3] (!%p198_p2) }
   0x9   : > { %v255_v6 = vsub.s32 (!%p198_p2), 0, %v254_v2  ;;  %v259_v7 = vsub.s32 (!%p198_p2), 1, %v254_v2  ;;  %v708_v18 = vld [vmem:[%s916_s4 + $0x2] ss:$4 sm:$0x3] (!%p198_p2)  ;;  %s762_s14 = smov (!%p198_p2), 15  }
   0xa   : > { %s763_s15 = smov (!%p198_p2), 1   ;;  %s764_s16 = smov (!%p198_p2), 17   ;;  %vm361_vm0 = vcmask (!%p198_p2), 1039360   ;;  %vm265_vm1 = vcmask (!%p198_p2), 908288   ;;  %vm323_vm2 = vcmask (!%p198_p2), 924672   ;;  %vm377_vm3 = vcmask (!%p198_p2), 7168  }
   0xb   : > { %v352_v9 = vrot.slane (!%p198_p2), %v347_v3, %v255_v6  ;;  %v356_v10 = vrot.slane (!%p198_p2), %v347_v3, %v259_v7  ;;  %v256_v11 = vrot.slane (!%p198_p2), %v251_v4, %v255_v6  ;;  %v260_v12 = vrot.slane (!%p198_p2), %v251_v4, %v259_v7  ;;  %s765_s17 = smov (!%p198_p2), 16  }
   0xc   : > { %v314_v14 = vrot.slane (!%p198_p2), %v706_v5, %v255_v6  ;;  %v318_v15 = vrot.slane (!%p198_p2), %v706_v5, %v259_v7  ;;  %v434_v16 = vrot.slane (!%p198_p2), %v429_v8, %v255_v6  ;;  %v438_v17 = vrot.slane (!%p198_p2), %v429_v8, %v259_v7 }
   0xd   : > { %s919_s19 = smov (!%p230_p3, %s695_s19), 1  ;;  %v357_v19 = vcombine.low %v352_v9, %v356_v10  ;;  %v261_v20 = vcombine.low %v256_v11, %v260_v12  ;;  %v397_v22 = vrot.slane %v707_v13, %v255_v6  ;;  %v401_v23 = vrot.slane %v707_v13, %v259_v7  ;;  %v746_v33 = vld [vmem:[#allocation2 + $0xc] ss:$0 sps:$4 sm:$0xff]  }
   0xe   : > { %s824_s7 = sshll.u32 %s919_s19, 3  ;;  %v319_v21 = vcombine.low %v314_v14, %v318_v15  ;;  %v439_v24 = vcombine.low %v434_v16, %v438_v17  ;;  %v489_v25 = vrot.slane %v708_v18, %v255_v6  ;;  %v493_v26 = vrot.slane %v708_v18, %v259_v7  ;;  %s766_s19 = smov 112   ;;  %v428_v48 = vld [vmem:[#allocation2 + $0xc] sm:$0xf] }
   0xf   : > { %s234_s10 = scalar_lea.vmem %s912_s0, %s824_s7  ;;  %358 = vrot.lane.b32.xlu1 %v357_v19, %s759_s11  ;;  %262 = vrot.lane.b32.xlu0 %v261_v20, %s760_s12  ;;  %v402_v28 = vcombine.low %v397_v22, %v401_v23  ;;  %vm299_vm4 = vcmask 130048   ;;  %v391_v60 = vld [vmem:[#allocation2 + $0xc] sm:$0xf]  ;;  %vm338_vm5 = vcmask 121856   ;;  %vm475_vm6 = vcmask 916480   ;;  %s239_s26 = scalar_lea.vmem %s915_s3, %s824_s7 }
  0x10   : > { %v832_v27 = vld [vmem:[%s234_s10] sm:$0xff]  ;;  %v494_v29 = vcombine.low %v489_v25, %v493_v26  ;;  %vm280_vm7 = vcmask 138240   ;;  %v483_v22 = vld [vmem:[#allocation2 + $0xc] sm:$0xf]  ;;  %vm539_vm8 = vcmask 1043456   ;;  %vm535_vm9 = vcmask 293888   ;;  %s244_s29 = scalar_lea.vmem %s917_s5, %s824_s7 }
  0x11   : > { %248 = vst [vmem:[#allocation2 + $0x4] sm:$0xff] %v832_v27  ;;  %388 = vst [vmem:[#allocation3 + $0x20] sm:$0xf] %v832_v27  ;;  %v386_v54 = vcombine.high %v832_v27, %v832_v27  ;;  %v529_v25 = vld [vmem:[%s914_s2] sm:$0x7] }
  0x13   : > { %320 = vrot.lane.b32.xlu0 %v319_v21, %s761_s13  ;;  %440 = vrot.lane.b32.xlu1 %v439_v24, %s762_s14  ;;  %389 = vst [vmem:[#allocation3 + $0x28] sm:$0xf] %v386_v54  ;;  %v467_v21 = vcombine.low %v832_v27, %v832_v27  ;;  %v767_v24 = vmov 0  }
  0x14   : > { %743 = vset.pattern.permute.xlu0 %v767_v24 }
  0x17   : > { %403 = vrot.lane.b32.xlu0 %v402_v28, %s763_s15  ;;  %495 = vrot.lane.b32.xlu1 %v494_v29, %s764_s16 }
  0x18   : > { %v744_v30 = vld [vmem:[#allocation2 + $0x8] ss:$0 sps:$4 sm:$0xff]   ;;  %v287_v31 = vld [vmem:[#allocation2] sm:$0xff] }
  0x19   : > { %v291_v32 = vcombine.low %v287_v31, %v287_v31  ;;  %v250_v36 = vld [vmem:[#allocation2 + $0x8] sm:$0xf] }
  0x1a   : > { %v307_v43 = vld [vmem:[#allocation2 + $0x8] sm:$0xf] }
  0x1b   : > { %297 = vrot.lane.b32.xlu1 %v744_v30, %s765_s17  ;;  %295 = vrot.lane.b32.xlu0 %v287_v31, %s765_s17  ;;  %v346_v50 = vld [vmem:[#allocation2 + $0x8] sm:$0xf] }
  0x1f   : > { %293 = vrot.lane.b32.xlu1 %v291_v32, %s765_s17  ;;  %471 = vrot.lane.b32.xlu0 %v832_v27, %s766_s19 }
  0x23   : > { %473 = vrot.lane.b32.xlu1 %v746_v33, %s766_s19 }
  0x81   : > { %v359_v34 = vpop.permute.xlu1 %358  ;;  %v263_v35 = vpop.permute.xlu0 %262 }
  0x82   : > { %v360_v37 = vrot.slane %v359_v34, 4  ;;  %v264_v38 = vrot.slane %v263_v35, 4 }
  0x84   : > { %v362_v39 = vsel %vm361_vm0, %v360_v37, %v359_v34  ;;  %v270_v40 = vmul.f32 %v264_v38, %v250_v36  ;;  %v266_v45 = vsel %vm265_vm1, %v264_v38, %v263_v35  ;;  %v366_v58 = vmul.f32 %v360_v37, %v346_v50 }
  0x85   : > { %v365_v41 = vmul.f32 %v362_v39, %v287_v31  ;;  %v321_v42 = vpop.permute.xlu0 %320  ;;  %v441_v44 = vpop.permute.xlu1 %440  ;;  %v269_v51 = vmul.f32 %v287_v31, %v266_v45 }
  0x86   : > { %v322_v46 = vrot.slane %v321_v42, 4  ;;  %278 = vrot.lane.b32.xlu1 %v270_v40, %s764_s16  ;;  %v442_v47 = vrot.slane %v441_v44, 4  ;;  %v370_v2 = vcombine.low %v366_v58, %v366_v58 }
  0x87   : > { %373 = vrot.lane.b32.xlu0 %v365_v41, %s763_s15  ;;  %v273_v9 = vcombine.high %v269_v51, %v269_v51  ;;  %v369_v14 = vcombine.low %v365_v41, %v365_v41 }
  0x88   : > { %v328_v49 = vmul.f32 %v322_v46, %v307_v43  ;;  %v324_v55 = vsel %vm323_vm2, %v322_v46, %v321_v42  ;;  %v447_v56 = vmul.f32 %v442_v47, %v428_v48  ;;  %v443_v11 = vsel %vm338_vm5, %v442_v47, %v441_v44 }
  0x89   : > { %v404_v52 = vpop.permute.xlu0 %403  ;;  %v496_v53 = vpop.permute.xlu1 %495  ;;  %v327_v59 = vmul.f32 %v324_v55, %v287_v31  ;;  %v446_v15 = vmul.f32 %v443_v11, %v832_v27 }
  0x8a   : > { %336 = vrot.lane.b32.xlu1 %v328_v49, %s762_s14  ;;  %v405_v57 = vrot.slane %v404_v52, 4  ;;  %v497_v6 = vrot.slane %v496_v53, 4 }
  0x8b   : > { %274 = vrot.lane.b32.xlu0 %v269_v51, %s764_s16  ;;  %v331_v16 = vcombine.high %v327_v59, %v327_v59  ;;  %v450_v18 = vcombine.high %v446_v15, %v446_v15 }
  0x8c   : > { %v406_v63 = vsel %vm377_vm3, %v405_v57, %v404_v52  ;;  %v410_v1 = vmul.f32 %v405_v57, %v391_v60  ;;  %v498_v13 = vsel %vm280_vm7, %v497_v6, %v496_v53  ;;  %v502_v23 = vmul.f32 %v497_v6, %v483_v22 }
  0x8d   : > { %v298_v61 = vpop.permute.xlu1 %297  ;;  %v296_v62 = vpop.permute.xlu0 %295  ;;  %v409_v3 = vmul.f32 %v406_v63, %v832_v27  ;;  %v501_v17 = vmul.f32 %v498_v13, %v832_v27 }
  0x8e   : > { %455 = vrot.lane.b32.xlu1 %v447_v56, %s761_s13  ;;  %v301_v0 = vsel %vm299_vm4, %v296_v62, %v298_v61  ;;  %v414_v8 = vcombine.low %v410_v1, %v410_v1 }
  0x8f   : > { %332 = vrot.lane.b32.xlu0 %v327_v59, %s762_s14  ;;  %305 = vst [vmem:[#allocation3 + $0x8] sm:$0xf0] %v301_v0  ;;  %v505_v19 = vcombine.high %v501_v17, %v501_v17  ;;  %v413_v20 = vcombine.low %v409_v3, %v409_v3 }
  0x91   : > { %v294_v4 = vpop.permute.xlu1 %293  ;;  %v860_v7 = vpop.permute.xlu0 %471 }
  0x92   : > { %375 = vrot.lane.b32.xlu1 %v370_v2, %s763_s15  ;;  %v300_v5 = vsel %vm299_vm4, %v294_v4, %v296_v62 }
  0x93   : > { %417 = vrot.lane.b32.xlu0 %v409_v3, %s759_s11  ;;  %304 = vst [vmem:[#allocation3] sm:$0xf0] %v300_v5 }
  0x95   : > { %v474_v10 = vpop.permute.xlu1 %473 }
  0x96   : > { %419 = vrot.lane.b32.xlu1 %v414_v8, %s759_s11  ;;  %v477_v12 = vsel %vm475_vm6, %v860_v7, %v474_v10 }
  0x97   : > { %276 = vrot.lane.b32.xlu0 %v273_v9, %s764_s16  ;;  %481 = vst [vmem:[#allocation3 + $0x38] sm:$0xf0] %v477_v12  ;;  %v617_v9 = vld [vmem:[%s239_s26] sm:$0x77] }
  0x98   : > { %v619_v12 = vcombine.high %v617_v9, %v617_v9 }
  0x9a   : > { %371 = vrot.lane.b32.xlu1 %v369_v14, %s763_s15 }
  0x9b   : > { %334 = vrot.lane.b32.xlu0 %v331_v16, %s762_s14 }
  0x9e   : > { %451 = vrot.lane.b32.xlu1 %v446_v15, %s761_s13 }
  0x9f   : > { %453 = vrot.lane.b32.xlu0 %v450_v18, %s761_s13 }
  0xa2   : > { %508 = vrot.lane.b32.xlu1 %v505_v19, %s760_s12 }
  0xa3   : > { %415 = vrot.lane.b32.xlu0 %v413_v20, %s759_s11 }
  0xa6   : > { %506 = vrot.lane.b32.xlu1 %v501_v17, %s760_s12 }
  0xa7   : > { %469 = vrot.lane.b32.xlu0 %v467_v21, %s766_s19 }
  0xab   : > { %510 = vrot.lane.b32.xlu0 %v502_v23, %s760_s12 }
  0xaf   : > { %532 = vperm.xlu0 %743, %v529_v25  }
  0xf8   : > { %v279_v26 = vpop.permute.xlu1 %278 }
  0xf9   : > { %v374_v28 = vpop.permute.xlu0 %373 }
  0xfc   : > { %v337_v27 = vpop.permute.xlu1 %336 }
  0xfd   : > { %v275_v29 = vpop.permute.xlu0 %274 }
 0x100   : > { %v456_v30 = vpop.permute.xlu1 %455 }
 0x101   : > { %v333_v31 = vpop.permute.xlu0 %332 }
 0x104   : > { %v376_v32 = vpop.permute.xlu1 %375 }
 0x105   : > { %v379_v33 = vsel %vm377_vm3, %v374_v28, %v376_v32  ;;  %v418_v34 = vpop.permute.xlu0 %417 }
 0x106   : > { %383 = vst [vmem:[#allocation3 + $0x18] sm:$0xf0] %v379_v33 }
 0x108   : > { %v420_v35 = vpop.permute.xlu1 %419 }
 0x109   : > { %v422_v36 = vsel %vm361_vm0, %v418_v34, %v420_v35  ;;  %v277_v37 = vpop.permute.xlu0 %276 }
 0x10a   : > { %426 = vst [vmem:[#allocation3 + $0x28] sm:$0xf0] %v422_v36  ;;  %v281_v38 = vsel %vm280_vm7, %v275_v29, %v277_v37  ;;  %v282_v39 = vsel %vm280_vm7, %v277_v37, %v279_v26 }
 0x10b   : > { %285 = vst [vmem:[#allocation3] sm:$0xf] %v281_v38  ;;  %286 = vst [vmem:[#allocation3 + $0x8] sm:$0xf] %v282_v39 }
 0x10c   : > { %v372_v40 = vpop.permute.xlu1 %371 }
 0x10d   : > { %v378_v41 = vsel %vm377_vm3, %v372_v40, %v374_v28  ;;  %v335_v42 = vpop.permute.xlu0 %334 }
 0x10e   : > { %382 = vst [vmem:[#allocation3 + $0x10] sm:$0xf0] %v378_v41  ;;  %v339_v43 = vsel %vm338_vm5, %v333_v31, %v335_v42  ;;  %v340_v44 = vsel %vm338_vm5, %v335_v42, %v337_v27 }
 0x10f   : > { %343 = vst [vmem:[#allocation3 + $0x10] sm:$0xf] %v339_v43  ;;  %344 = vst [vmem:[#allocation3 + $0x18] sm:$0xf] %v340_v44 }
 0x110   : > { %v452_v45 = vpop.permute.xlu1 %451 }
 0x111   : > { %v454_v46 = vpop.permute.xlu0 %453  ;;  %v524_v62 = vld [vmem:[#allocation3 + $0x28] sm:$0xff] }
 0x112   : > { %v457_v47 = vsel %vm323_vm2, %v452_v45, %v454_v46  ;;  %v458_v48 = vsel %vm323_vm2, %v454_v46, %v456_v30  ;;  %v520_v51 = vld [vmem:[#allocation3 + $0x8] sm:$0xff]  ;;  %v519_v54 = vld [vmem:[#allocation3] sm:$0xff] }
 0x113   : > { %461 = vst [vmem:[#allocation3 + $0x30] sm:$0xf] %v457_v47  ;;  %462 = vst [vmem:[#allocation3 + $0x38] sm:$0xf] %v458_v48 }
 0x114   : > { %v509_v49 = vpop.permute.xlu1 %508 }
 0x115   : > { %v416_v50 = vpop.permute.xlu0 %415 }
 0x116   : > { %v421_v52 = vsel %vm361_vm0, %v416_v50, %v418_v34  ;;  %v522_v53 = vld [vmem:[#allocation3 + $0x18] sm:$0xff]  ;;  %v521_v55 = vld [vmem:[#allocation3 + $0x10] sm:$0xff] }
 0x117   : > { %425 = vst [vmem:[#allocation3 + $0x20] sm:$0xf0] %v421_v52  ;;  %v717_v56 = vpack.c.bf16 %v522_v53, %v520_v51  ;;  %v719_v57 = vpack.c.bf16 %v521_v55, %v519_v54 }
 0x118   : > { %v507_v58 = vpop.permute.xlu1 %506 }
 0x119   : > { %v512_v59 = vsel %vm265_vm1, %v507_v58, %v509_v49  ;;  %718 = vmatprep.subr.bf16.mxu0 %v717_v56  ;;  %v470_v60 = vpop.permute.xlu0 %469 }
 0x11a   : > { %516 = vst [vmem:[#allocation3 + $0x40] sm:$0xf] %v512_v59  ;;  %v476_v61 = vsel %vm475_vm6, %v470_v60, %v860_v7  ;;  %720 = vmatpush1.bf16.msra.mxu0 %v719_v57  ;;  %v526_v63 = vld [vmem:[#allocation3 + $0x38] sm:$0xff]  ;;  %v518_v7 = vld [vmem:[%s913_s1] sm:$0x7] }
 0x11b   : > { %480 = vst [vmem:[#allocation3 + $0x30] sm:$0xf0] %v476_v61  ;;  %v721_v0 = vpack.c.bf16 %v526_v63, %v524_v62 }
 0x11d   : > { %722 = vmatprep.subr.bf16.mxu0 %v721_v0  ;;  %v511_v1 = vpop.permute.xlu0 %510 }
 0x11e   : > { %v513_v2 = vsel %vm265_vm1, %v509_v49, %v511_v1  ;;  %v523_v3 = vld [vmem:[#allocation3 + $0x20] sm:$0xff] }
 0x11f   : > { %517 = vst [vmem:[#allocation3 + $0x48] sm:$0xf] %v513_v2 }
 0x121   : > { %v527_v8 = vld [vmem:[#allocation3 + $0x40] sm:$0xf] }
 0x122   : > { %v525_v4 = vld [vmem:[#allocation3 + $0x30] sm:$0xff] }
 0x123   : > { %v723_v5 = vpack.c.bf16 %v525_v4, %v523_v3 }
 0x125   : > { %724 = vmatpush1.bf16.msra.mxu0 %v723_v5 }
 0x126   : > { %v528_v6 = vld [vmem:[#allocation3 + $0x48] sm:$0xf] }
 0x127   : > { %709 = vmatprep.subr.msk.mxu0 %vm539_vm8, %v528_v6 }
 0x129   : > { %710 = vmatpush1.msk.msra.mxu0 %vm539_vm8, %v527_v8 }
 0x12a   : > { %711 = vmatmul.mubr.msk.f32.vlgmr.msra.gmra.mrb[0].mxu0 %vm535_vm9, %v518_v7 }
 0x12e   : > { %v533_v10 = vpop.permute.xlu0 %532 }
 0x1fd   : > { %v612_v11 = vpop.f32.mrb[0].mxu0 }
 0x1fe   : > { %v613_v13 = vadd.f32 %v612_v11, %v533_v10  ;;  %v614_v14 = vpop.f32.mrb[1].mxu0 }
 0x1ff   : > { %v615_v15 = vadd.f32 %v614_v14, %v533_v10 }
 0x200   : > { %v621_v16 = vmul.f32 %v617_v9, %v613_v13 }
 0x201   : > { %v622_v17 = vmul.f32 %v619_v12, %v615_v15 }
 0x203   : > { %v625_v18 = vcombine.low %v621_v16, %v622_v17 }
 0x205   : > { %627 = vst [vmem:[%s244_s29] sm:$0x77] %v625_v18 }
 0x206 PF: > { %s15_s18 = sadd.s32 1, %s756_s18  }
 0x207   : > { %p12_p4 = scmp.ge.s32.totalorder %s15_s18, 4  }
 0x209   :  { %14 = sbr.rel (!%p12_p4) target bundleno = 1 (0x1), region = 74 }

</bundles_post_ra>
